<compile_context>
chip_gen: v7x
topology: tpu7x:2x2x1
jax: 0.10.0
libtpu: 0.0.40
codegen_flags: <defaults>
</compile_context>

<pallas_src>
import jax
import jax.numpy as jnp
from jax.experimental import pallas as pl
from jax.experimental.pallas import tpu as pltpu


# ----------------------------------------------------------------------------
# Pallas kernel
# ----------------------------------------------------------------------------

def _conv_mm_kernel(p_ref, w_ref, o_ref):
    """One (batch, spatial-tile) grid step.

    p_ref: (9*Cin, tn)   bf16  im2col patches (K-major, spatial last = lanes)
    w_ref: (Cout, 9*Cin) bf16  conv weight as a matrix (resident block)
    o_ref: (Cout, tn)    f32   lane-dense output tile
    """
    o_ref[...] = jnp.dot(w_ref[...], p_ref[...],
                         preferred_element_type=jnp.float32)


# ----------------------------------------------------------------------------
# Wrapper
# ----------------------------------------------------------------------------

def _pick_lane_tile(n, max_tile=512):
    """Largest tile <= max_tile that is a multiple of 128 and divides n
    (falls back to the full extent when n is not a multiple of 128)."""
    if n % 128 != 0:
        return n
    t = min(max_tile, n)
    t -= t % 128
    while n % t != 0:
        t -= 128
    return t


def downsample_forward(x_nchw, weight):
    """x: (b, Cin, H, W) f32; weight: (Cout=Cin//2, Cin, 3, 3) f32.
    Returns PixelUnshuffle(2)(conv3x3(x)): (b, 4*Cout, H//2, W//2) f32."""
    b, cin, H, W = x_nchw.shape
    cout = weight.shape[0]
    assert H % 2 == 0 and W % 2 == 0, "PixelUnshuffle(2) needs even H, W"
    hw = H * W
    K = 9 * cin

    # ---- im2col (glue): 9 shifted slices of the zero-padded input ----------
    xp = jnp.pad(x_nchw, ((0, 0), (0, 0), (1, 1), (1, 1)))
    taps = [xp[:, :, di:di + H, dj:dj + W]
            for di in range(3) for dj in range(3)]            # 9 x (b,Cin,H,W)
    patches = jnp.concatenate(taps, axis=1).reshape(b, K, hw)
    patches = patches.astype(jnp.bfloat16)                    # bf16 MXU operand

    # weight (Cout,Cin,3,3) -> (Cout, 9*Cin) matching tap-major/channel-minor K
    w_mat = jnp.transpose(weight, (0, 2, 3, 1)).reshape(cout, K)
    w_mat = w_mat.astype(jnp.bfloat16)

    tn = _pick_lane_tile(hw)
    grid = (b, hw // tn)

    conv_flat = pl.pallas_call(
        _conv_mm_kernel,
        out_shape=jax.ShapeDtypeStruct((b, cout, hw), jnp.float32),
        grid=grid,
        in_specs=[
            # batch dim squeezed out of the kernel ref via block size None
            pl.BlockSpec((None, K, tn), lambda bi, ni: (bi, 0, ni)),
            pl.BlockSpec((cout, K), lambda bi, ni: (0, 0)),
        ],
        out_specs=pl.BlockSpec((None, cout, tn), lambda bi, ni: (bi, 0, ni)),
        compiler_params=pltpu.CompilerParams(
            dimension_semantics=("parallel", "parallel"),
            vmem_limit_bytes=32 * 1024 * 1024),
    )(patches, w_mat)

    # ---- PixelUnshuffle(2): pure relayout, done as glue ---------------------
    y = conv_flat.reshape(b, cout, H, W)
    y = y.reshape(b, cout, H // 2, 2, W // 2, 2)
    y = jnp.transpose(y, (0, 1, 3, 5, 2, 4))                  # (b,c,i,j,h2,w2)
    return y.reshape(b, cout * 4, H // 2, W // 2)


# ----------------------------------------------------------------------------
# Pure-JAX reference (correctness check)
# ----------------------------------------------------------------------------

def reference_downsample(x, weight):
    y = jax.lax.conv_general_dilated(
        x, weight, window_strides=(1, 1), padding=((1, 1), (1, 1)),
        dimension_numbers=("NCHW", "OIHW", "NCHW"))
    b, c, H, W = y.shape
    y = y.reshape(b, c, H // 2, 2, W // 2, 2)
    y = jnp.transpose(y, (0, 1, 3, 5, 2, 4))
    return y.reshape(b, c * 4, H // 2, W // 2)


# ----------------------------------------------------------------------------
# Main
# ----------------------------------------------------------------------------

if __name__ == "__main__":
    b, n_feat, H, W = 2, 4, 16, 16          # x: (2, 4, 16, 16)

    key = jax.random.PRNGKey(0)
    kx, kw = jax.random.split(key)
    x = jax.random.normal(kx, (b, n_feat, H, W), jnp.float32)
    weight = jax.random.normal(kw, (n_feat // 2, n_feat, 3, 3), jnp.float32) * 0.2

    out = jax.block_until_ready(downsample_forward(x, weight))
    ref = jax.block_until_ready(reference_downsample(x, weight))

    assert out.shape == (b, 2 * n_feat, H // 2, W // 2), out.shape
    err = float(jnp.max(jnp.abs(out - ref)))
    scale = float(jnp.max(jnp.abs(ref))) + 1e-8
    assert err / scale < 2e-2, f"mismatch: rel err {err / scale}"

    print("KERNEL_OK")
</pallas_src>

<mosaic_0001>
module attributes {stable_mosaic.version = 11 : i64} {
  func.func @_conv_mm_kernel(%arg0: i32, %arg1: i32, %arg2: memref<1x36x256xbf16, #tpu.memory_space<vmem>>, %arg3: memref<2x36xbf16, #tpu.memory_space<vmem>>, %arg4: memref<1x2x256xf32, #tpu.memory_space<vmem>>) attributes {dimension_semantics = [#tpu.dimension_semantics<parallel>, #tpu.dimension_semantics<parallel>], iteration_bounds = array<i64: 2, 1>, scalar_prefetch = 0 : i64, scratch_operands = 0 : i64, tpu.core_type = #tpu.core_type<tc>, window_params = [{transform_indices = @transform_0, window_bounds = array<i64: 1, 36, 256>}, {pipeline_mode = #tpu.pipeline_mode<synchronous>, transform_indices = @transform_1, window_bounds = array<i64: 2, 36>}, {transform_indices = @transform_2, window_bounds = array<i64: 1, 2, 256>}]} {
    %c0 = arith.constant 0 : index
    %c0_0 = arith.constant 0 : index
    %0 = vector.load %arg3[%c0, %c0_0] : memref<2x36xbf16, #tpu.memory_space<vmem>>, vector<2x36xbf16>
    %c0_1 = arith.constant 0 : index
    %c0_2 = arith.constant 0 : index
    %c0_3 = arith.constant 0 : index
    %1 = vector.load %arg2[%c0_1, %c0_2, %c0_3] : memref<1x36x256xbf16, #tpu.memory_space<vmem>>, vector<1x36x256xbf16>
    %2 = vector.shape_cast %1 : vector<1x36x256xbf16> to vector<36x256xbf16>
    %cst = arith.constant dense<0.000000e+00> : vector<2x256xf32>
    %3 = tpu.matmul %0, %2, %cst {dimension_numbers = #tpu.dot_dimension_numbers<[1], [0], [0], [1], [0, 0, 1, 1], [], []>} : vector<2x36xbf16>, vector<36x256xbf16>, vector<2x256xf32> -> vector<2x256xf32>
    %c0_4 = arith.constant 0 : index
    %c0_5 = arith.constant 0 : index
    %c0_6 = arith.constant 0 : index
    %4 = vector.load %arg4[%c0_4, %c0_5, %c0_6] : memref<1x2x256xf32, #tpu.memory_space<vmem>>, vector<1x2x256xf32>
    %5 = vector.shape_cast %4 : vector<1x2x256xf32> to vector<2x256xf32>
    %6 = vector.shape_cast %3 : vector<2x256xf32> to vector<1x2x256xf32>
    tpu.vector_store %arg4[%c0_4, %c0_5, %c0_6], %6 {strides = array<i32>} : memref<1x2x256xf32, #tpu.memory_space<vmem>>, vector<1x2x256xf32>,
    return
  }
  func.func @transform_0(%arg0: i32, %arg1: i32) -> (i32, i32, i32) {
    %c0_i32 = arith.constant 0 : i32
    %c0_i32_0 = arith.constant 0 : i32
    return %arg0, %c0_i32, %arg1 : i32, i32, i32
  }
  func.func @transform_1(%arg0: i32, %arg1: i32) -> (i32, i32) {
    %c0_i32 = arith.constant 0 : i32
    %c0_i32_0 = arith.constant 0 : i32
    %c0_i32_1 = arith.constant 0 : i32
    return %c0_i32, %c0_i32_0 : i32, i32
  }
  func.func @transform_2(%arg0: i32, %arg1: i32) -> (i32, i32, i32) {
    %c0_i32 = arith.constant 0 : i32
    %c0_i32_0 = arith.constant 0 : i32
    return %arg0, %c0_i32, %arg1 : i32, i32, i32
  }
}

</mosaic_0001>

<bundles_post_ra>
// kernel: tpu_custom_call.1
= control target key start
LH: loop header
LB: loop body
LE: loop exit
PB: predicated region body
PF: predicated region fallthrough
CT: control target
= control target key end

     0   :  { %7 = vsyncpa [#allocation3], 0  ;;  %s661_s0 = inlined_call_operand.vmem [shape: bf16[2,36,256], index: 0, kind: input, shape index: {}]   ;;  %s662_s1 = inlined_call_operand.vmem [shape: bf16[2,36], index: 1, kind: input, shape index: {}]   ;;  %s663_s2 = inlined_call_operand.hbm [shape: f32[2,2,256], index: 2, kind: output, shape index: {}]  }
   0x1   :  { %9 = vsyncpa [#allocation3 + $0x1], 0  ;;  %s546_s9 = smov 0   ;;  %s548_s10 = smov 0  }
   0x2   :  { %s550_s11 = smov 0   ;;  %s552_s12 = smov 0  }
   0x3   :  { %s554_s13 = smov 0   ;;  %s556_s14 = smov 0  }
   0x4 LB: > { %s362_s15 = sadd.s32 4294967295, %s527_s14   ;;  %s363_s16 = sadd.s32 4294967294, %s527_s14   ;;  %s527_s14 = sphi %s556_s14, %s15_s14   ;;  %s523_s13 = sphi %s554_s13, %s670_s13   ;;  %s519_s12 = sphi %s552_s12, %s669_s12   ;;  %s515_s11 = sphi %s550_s11, %s668_s11   ;;  %s511_s10 = sphi %s548_s10, %s667_s10   ;;  %s507_s9 = sphi %s546_s9, %s666_s9  }
   0x5   : > { %s27_s17 = sadd.s32 1, %s523_s13  ;;  %s85_s18 = sadd.s32 1, %s515_s11 }
   0x6   : > { %p29_p0 = scmp.ge.s32.totalorder %s27_s17, 2  ;;  %p95_p1 = scmp.ne.s32.totalorder %s515_s11, %s511_s10 }
   0x7   : > { %p96_p2 = scmp.eq.s32.totalorder %s362_s15, 1  ;;  %p101_p3 = scmp.ne.s32.totalorder %s511_s10, %s507_s9 }
   0x8   : > { %s672_s17 = smov (%p29_p0, %s27_s17), 0  ;;  %p102_p5 = scmp.eq.s32.totalorder %s363_s16, 1 }
   0x9   : > { %p586_p4 = por %p96_p2, %p95_p1  ;;  %s80_s20 = ssub.s32 %s523_s13, %s672_s17 }
   0xa   : > { %p366_p6 = scmp.ge.s32.totalorder %s527_s14, 1  ;;  %p83_p7 = scmp.eq.s32.totalorder %s80_s20, 0 }
   0xb   : > { %p593_p8 = por %p102_p5, %p101_p3  ;;  %p136_p9 = scmp.lt.s32.totalorder %s527_s14, 3 }
   0xc   : > { %s599_s22 = scalar_select %p83_p7, %s515_s11, %s85_s18  }
   0xd   : > { %p137_p10 = pnand %p366_p6, %p136_p9 }
   0xe   : > { %p163_p11 = scmp.lt.s32.totalorder (!%p137_p10), %s519_s12, 1  ;;  %v529_v0 = vmov (!%p137_p10), 0   ;;  %vm209_vm0 = vcmask (!%p137_p10), 1041408   ;;  %v174_v9 = vld [vmem:[%s662_s1] sm:$0x1] (!%p137_p10)  ;;  %vm205_vm1 = vcmask (!%p137_p10), 293888  }
   0xf   : > { %140 = sbr.rel (%p137_p10) target bundleno = 269 (0x10d), region = 28  ;;  %248 = vmatprep.mubr.bf16.mxu0 (!%p137_p10), %v529_v0  ;;  %s159_s30 = sand.u32 (!%p137_p10), 1, %s511_s10  }
  0x10   : > { %s367_s3 = sshll.u32 (!%p137_p10), %s159_s30, 2  ;;  %s383_s4 = sshll.u32 (!%p137_p10), %s519_s12, 6 }
  0x11   : > { %s161_s5 = scalar_lea.vmem (!%p137_p10), [#allocation2], %s367_s3  ;;  %s614_s15 = scalar_lea.hbm (!%p137_p10), %s663_s2, %s383_s4 }
  0x12   : > { %s286_s6 = sshll.u32 (!%p137_p10), %s161_s5, 4  ;;  %s270_s16 = scalar_lea.sflag (!%p137_p10), [#allocation3], %s159_s30  ;;  %s616_s6 = int_to_ptr.vmem [resolvable:$true] %s286_s6 }
  0x13   : > { %s530_s18 = smov (!%p137_p10), [#allocation2]  }
  0x14   : > { %s453_s20 = sshll.u32 (!%p137_p10), %s530_s18, 4  ;;  %s454_s20 = int_to_ptr.vmem [resolvable:$false] %s453_s20 }
  0x15   : > { %p456_p1 = scmp.lt.s32.totalorder (!%p137_p10), %s616_s6, %s454_s20 }
  0x16   : > { %s164_s23 = scalar_select %p163_p11, %s519_s12, 1 }
  0x17   : > { %s449_s12 = scalar_lea.vmem %s616_s6, 64 }
  0x18   : > { %s384_s24 = smul.u32 40, %s164_s23  ;;  %p450_p12 = scmp.ne.s32.totalorder %s616_s6, %s449_s12 }
  0x19   : > { %s455_s23 = scalar_lea.vmem %s454_s20, 128 }
  0x1a   : > { %s170_s27 = scalar_lea.vmem %s661_s0, %s384_s24  ;;  %p451_p13 = pnand %p450_p12, %p586_p4 }
  0x1b   : > { %v441_v1 = vld [vmem:[%s170_s27 + $0x4] ss:$8 sps:$4 sm:$0xff]   ;;  %v443_v2 = vld [vmem:[%s170_s27] ss:$8 sps:$4 sm:$0xff]   ;;  %v444_v3 = vld [vmem:[%s170_s27 + $0x14] ss:$8 sps:$4 sm:$0xff]   ;;  %p457_p2 = scmp.lt.s32.totalorder %s455_s23, %s449_s12 }
  0x1c   : > { %216 = vmatprep.subr.bf16.mxu0 %v441_v1  ;;  %v179_v4 = vld [vmem:[%s170_s27 + $0x20] sm:$0x33]  ;;  %v446_v5 = vld [vmem:[%s170_s27 + $0x10] ss:$8 sps:$4 sm:$0xff]   ;;  %p452_p0 = pneg %p451_p13 }
  0x1d   : > { %217 = vmatpush1.bf16.msra.mxu0 %v443_v2  ;;  %v374_v6 = vcombine.high %v179_v4, %v179_v4  ;;  %v373_v7 = vcombine.low %v179_v4, %v179_v4  ;;  %p458_p3 = por %p457_p2, %p456_p1 }
  0x1e   : > { %218 = vmatprep.subr.bf16.mxu0 %v444_v3 }
  0x1f   : > { %v211_v8 = vsel %vm209_vm0, %v373_v7, 0  ;;  %p459_p5 = pnand %p458_p3, %p452_p0 }
  0x21   : > { %219 = vmatpush1.bf16.msra.mxu0 %v446_v5 }
  0x22   : > { %375 = vmatprep.subr.msk.bf16.mxu0 %vm209_vm0, %v374_v6 }
  0x25   : > { %221 = vmatpush1.bf16.msra.mxu0 %v211_v8 }
  0x28   : > { %376 = vmatmul.mubr.msk.bf16.vlgmr.msra.gmra.mrb[0].mxu0 %vm205_vm1, %v174_v9 }
  0xfb   : > { %v250_v10 = vpop.f32.mrb[0].mxu0 }
  0xfc   : > { %v252_v11 = vpop.f32.mrb[1].mxu0 }
  0xfd   : > { %v259_v12 = vcombine.low %v250_v10, %v252_v11  ;;  %v254_v13 = vpop.f32.mrb[2].mxu0 }
  0xfe   : > { %v255_v14 = vpop.f32.mrb[3].mxu0 }
  0xff   : > { %377 = vst.sshfl [vmem:[%s161_s5] sm:$0x33 pattern:$0x76325410] %v259_v12 }
 0x100   : > { %462 = shalt.err (!%p459_p5)
}
 0x101   : > { %s463_s24 = scalar_lea.hbm %s614_s15, 64  ;;  %s467_s27 = scalar_lea.hbm %s663_s2, 128 }
 0x102   : > { %p464_p6 = scmp.ne.s32.totalorder %s614_s15, %s463_s24  ;;  %p468_p10 = scmp.lt.u32.totalorder %s614_s15, %s663_s2 }
 0x103   : > { %p469_p11 = scmp.lt.u32.totalorder %s467_s27, %s463_s24  ;;  %p471_p13 = scmp.lt.u32.totalorder %s463_s24, %s614_s15 }
 0x104   : > { %p465_p7 = pnand %p464_p6, %p586_p4 }
 0x105   : > { %p470_p12 = por %p469_p11, %p468_p10 }
 0x106   : > { %p466_p9 = pneg %p465_p7 }
 0x107   : > { %p472_p0 = por %p471_p13, %p470_p12 }
 0x109   : > { %p473_p1 = pnand %p472_p0, %p466_p9 }
 0x10b   : > { %476 = shalt.err (!%p473_p1)
}
 0x10c   : > { %385 = dma.vmem_to_hbm [thread:$0]  (%p586_p4), %s616_s6, 64, %s614_s15, %s270_s16  }
 0x10d PF: > { %p391_p2 = scmp.ge.s32.totalorder %s527_s14, 2  ;;  %s298_s30 = sand.u32 1, %s507_s9  }
 0x10e   : > { %s299_s3 = scalar_lea.sflag [#allocation3], %s298_s30 }
 0x10f   : > { %p388_p3 = pnand %p391_p2, %p593_p8 }
 0x111   : > { %502 = dma.done.wait (!%p388_p3), %s299_s3, 64  }
 0x112   : > { %504 = vsyncadd (!%p388_p3), %s299_s3, 4294967232  ;;  %s15_s14 = sadd.s32 1, %s527_s14   ;;  %s666_s9 = smov %s511_s10 }
 0x113   : > { %p12_p5 = scmp.ge.s32.totalorder %s15_s14, 4   ;;  %s667_s10 = smov %s515_s11 }
 0x114   : > { %s668_s11 = smov %s599_s22  ;;  %s669_s12 = smov %s523_s13 }
 0x115   : > { %s670_s13 = smov %s672_s17  ;;  %14 = sbr.rel (!%p12_p5) target bundleno = 4 (0x4), region = 63 }
 0x11c   :  { %304 = vsyncpa [#allocation3], 1 }
 0x11d   :  { %306 = vsyncpa [#allocation3 + $0x1], 1 }

</bundles_post_ra>
